<compile_context>
chip_gen: v5e
topology: v5e:2x2
jax: 0.10.0
libtpu: 0.0.40
codegen_flags: <defaults>
</compile_context>

<pallas_src>
import functools

import jax
import jax.numpy as jnp
from jax.experimental import pallas as pl
from jax.experimental.pallas import tpu as pltpu


# ---------------------------------------------------------------------------
# Pallas kernel: elementwise residual add on a lane-dense (rows, 128) slab.
# ---------------------------------------------------------------------------
def _residual_add_kernel(fx_ref, x_ref, o_ref):
    # Single full-block, unmasked lane-dense store.
    o_ref[...] = fx_ref[...] + x_ref[...]


_LANES = 128
_ROW_ALIGN = 32        # covers native sublane tiling for f32 / bf16 / int8 / fp8
_MAX_BLOCK_ROWS = 2048  # 2048 * 128 * 4 B = 1 MiB per f32 operand block


def _round_up(a, m):
    return ((a + m - 1) // m) * m


@functools.partial(jax.jit, static_argnames=())
def residual_add(fx, x):
    """Compute fx + x with a Pallas TPU kernel. Shapes/dtypes must match."""
    assert fx.shape == x.shape, (fx.shape, x.shape)
    assert fx.dtype == x.dtype, (fx.dtype, x.dtype)
    orig_shape = x.shape
    dtype = x.dtype

    n = x.size
    rows = pl.cdiv(n, _LANES)
    lane_pad = rows * _LANES - n  # < 128; zero for 128-divisible sizes

    def _prep(a):
        a = a.reshape(-1)
        if lane_pad:
            a = jnp.pad(a, (0, lane_pad))
        return a.reshape(rows, _LANES)

    fx2 = _prep(fx)
    x2 = _prep(x)

    # Large, aligned row blocks; Pallas masks the ragged last block itself.
    block_rows = min(_MAX_BLOCK_ROWS, _round_up(rows, _ROW_ALIGN))
    grid = (pl.cdiv(rows, block_rows),)

    out = pl.pallas_call(
        _residual_add_kernel,
        out_shape=jax.ShapeDtypeStruct((rows, _LANES), dtype),
        grid=grid,
        in_specs=[
            pl.BlockSpec((block_rows, _LANES), lambda i: (i, 0)),
            pl.BlockSpec((block_rows, _LANES), lambda i: (i, 0)),
        ],
        out_specs=pl.BlockSpec((block_rows, _LANES), lambda i: (i, 0)),
        compiler_params=pltpu.CompilerParams(
            dimension_semantics=("parallel",),
        ),
    )(fx2, x2)

    out = out.reshape(-1)
    if lane_pad:
        out = out[:n]
    return out.reshape(orig_shape)


# ---------------------------------------------------------------------------
# Residual wrapper: forward(x, *args, **kwargs) = fn(x, *args, **kwargs) + x
# ---------------------------------------------------------------------------
class Residual:
    # TODO(synk): the wrapped `fn` is an arbitrary submodule in PyTorch; here it
    # is any JAX callable — only the `+ x` residual add is a Pallas kernel.
    def __init__(self, fn):
        self.fn = fn

    def __call__(self, x, *args, **kwargs):
        return residual_add(self.fn(x, *args, **kwargs), x)


if __name__ == "__main__":
    key = jax.random.PRNGKey(0)
    k_x, k_w = jax.random.split(key)

    # Small NCHW feature map, like an intermediate U-Net activation.
    B, C, H, W = 2, 4, 16, 16
    x = jax.random.normal(k_x, (B, C, H, W), dtype=jnp.float32)

    # Deterministic demo `fn`: a fixed 1x1 "conv" (channel mix) + GELU.
    w = jax.random.normal(k_w, (C, C), dtype=jnp.float32) * 0.1

    def fn(t):
        mixed = jnp.einsum("bchw,cd->bdhw", t, w)
        return jax.nn.gelu(mixed)

    block = Residual(fn)
    out = block(x)
    out = jax.block_until_ready(out)

    # Pure-JAX reference for the module forward: fn(x) + x.
    ref = fn(x) + x
    assert out.shape == x.shape
    assert out.dtype == x.dtype
    assert jnp.allclose(out, ref, atol=1e-5, rtol=1e-5)

    # Extra sanity: a size that is NOT a multiple of 128 (exercises the tail
    # pad + ragged-block path), and a bf16 case (exercises sublane packing).
    y = jax.random.normal(k_x, (3, 5, 7), dtype=jnp.float32)
    assert jnp.allclose(residual_add(2.0 * y, y), 3.0 * y, atol=1e-5, rtol=1e-5)
    z = jax.random.normal(k_w, (2, 4, 16, 16), dtype=jnp.bfloat16)
    assert jnp.allclose(
        residual_add(z, z).astype(jnp.float32),
        (z + z).astype(jnp.float32),
        atol=1e-2,
        rtol=1e-2,
    )

    print("KERNEL_OK")
</pallas_src>

<mosaic_0001>
module attributes {stable_mosaic.version = 11 : i64} {
  func.func @_residual_add_kernel(%arg0: i32, %arg1: memref<32x128xf32, #tpu.memory_space<vmem>>, %arg2: memref<32x128xf32, #tpu.memory_space<vmem>>, %arg3: memref<32x128xf32, #tpu.memory_space<vmem>>) attributes {dimension_semantics = [#tpu.dimension_semantics<parallel>], iteration_bounds = array<i64: 1>, scalar_prefetch = 0 : i64, scratch_operands = 0 : i64, tpu.core_type = #tpu.core_type<tc>, window_params = [{transform_indices = @transform_0, window_bounds = array<i64: 32, 128>}, {transform_indices = @transform_1, window_bounds = array<i64: 32, 128>}, {transform_indices = @transform_2, window_bounds = array<i64: 32, 128>}]} {
    %c0 = arith.constant 0 : index
    %c0_0 = arith.constant 0 : index
    %0 = vector.load %arg1[%c0, %c0_0] : memref<32x128xf32, #tpu.memory_space<vmem>>, vector<32x128xf32>
    %c0_1 = arith.constant 0 : index
    %c0_2 = arith.constant 0 : index
    %1 = vector.load %arg2[%c0_1, %c0_2] : memref<32x128xf32, #tpu.memory_space<vmem>>, vector<32x128xf32>
    %2 = arith.addf %0, %1 : vector<32x128xf32>
    %c0_3 = arith.constant 0 : index
    %c0_4 = arith.constant 0 : index
    %3 = vector.load %arg3[%c0_3, %c0_4] : memref<32x128xf32, #tpu.memory_space<vmem>>, vector<32x128xf32>
    tpu.vector_store %arg3[%c0_3, %c0_4], %2 {strides = array<i32>} : memref<32x128xf32, #tpu.memory_space<vmem>>, vector<32x128xf32>,
    return
  }
  func.func @transform_0(%arg0: i32) -> (i32, i32) {
    %c0_i32 = arith.constant 0 : i32
    %c0_i32_0 = arith.constant 0 : i32
    return %arg0, %c0_i32 : i32, i32
  }
  func.func @transform_1(%arg0: i32) -> (i32, i32) {
    %c0_i32 = arith.constant 0 : i32
    %c0_i32_0 = arith.constant 0 : i32
    return %arg0, %c0_i32 : i32, i32
  }
  func.func @transform_2(%arg0: i32) -> (i32, i32) {
    %c0_i32 = arith.constant 0 : i32
    %c0_i32_0 = arith.constant 0 : i32
    return %arg0, %c0_i32 : i32, i32
  }
}

</mosaic_0001>

<bundles_post_ra>
// kernel: residual_add.1
= control target key start
LH: loop header
LB: loop body
LE: loop exit
PB: predicated region body
PF: predicated region fallthrough
CT: control target
= control target key end

     0   :  { %s105_s0 = inlined_call_operand.vmem [shape: f32[16,128], index: 0, kind: input, shape index: {}]   ;;  %s106_s1 = inlined_call_operand.vmem [shape: f32[16,128], index: 1, kind: input, shape index: {}]   ;;  %s107_s2 = inlined_call_operand.vmem [shape: f32[16,128], index: 2, kind: output, shape index: {}]  }
   0x1   :  { %v11_v0 = vld [vmem:[%s105_s0] sm:$0xff]  ;;  %v12_v2 = vld [vmem:[%s105_s0 + $0x8] sm:$0xff] }
   0x2   :  { %v15_v1 = vld [vmem:[%s106_s1] sm:$0xff]  ;;  %v16_v4 = vld [vmem:[%s106_s1 + $0x8] sm:$0xff] }
   0x3   :  { %v19_v3 = vadd.f32 %v15_v1, %v11_v0  ;;  %v20_v5 = vadd.f32 %v16_v4, %v12_v2 }
   0x5   :  { %60 = vst [vmem:[%s107_s2] sm:$0xff] %v19_v3 }
   0x6   :  { %62 = vst [vmem:[%s107_s2 + $0x8] sm:$0xff] %v20_v5 }

</bundles_post_ra>
